<compile_context>
chip_gen: v7x
topology: tpu7x:2x2x1
jax: 0.10.0
libtpu: 0.0.40
codegen_flags: <defaults>
</compile_context>

<pallas_src>
import math

import jax
import jax.numpy as jnp
from jax import lax
from jax.experimental import pallas as pl
from jax.experimental.pallas import tpu as pltpu

NUM_HEADS = 4
HEAD_DIM = 8
HIDDEN = NUM_HEADS * HEAD_DIM   # 32
SEQ = 8
BATCH = 2
LN_EPS = 1e-12
BITW = 8


def _dorefa_quantize_weight(w, bitw):
    # TODO(synk): quantized_Linear's exact quantization scheme is not provided
    # in the source; a deterministic DoReFa-style weight quantizer is used as a
    # stand-in (applied to Q/K/V weights only, matching bitW from the config).
    if bitw >= 32:
        return w
    n = float(2 ** bitw - 1)
    t = jnp.tanh(w)
    t = t / (2.0 * jnp.max(jnp.abs(t))) + 0.5
    return 2.0 * (jnp.round(t * n) / n) - 1.0


def bert_attention_kernel(x_ref, mask_ref,
                          wqkv_ref, bqkv_ref,
                          wo_ref, bo_ref, gamma_ref, beta_ref,
                          out_ref):
    """Single invocation; all operands resident in VMEM at these sizes.

    x_ref:    (B*S, H)   flattened hidden states
    mask_ref: (B, S)     additive attention mask (per key position)
    wqkv_ref: (H, 3H)    fused Q/K/V weights;  bqkv_ref: (1, 3H)
    wo_ref:   (H, H)     output dense weight;  bo_ref:   (1, H)
    gamma_ref/beta_ref: (1, H) LayerNorm params
    out_ref:  (B*S, H)
    """
    x = x_ref[...]                                     # (B*S, H)
    mask2d = mask_ref[...]                             # (B, S)

    # Fused QKV projection: one MXU matmul instead of three.
    qkv = jnp.dot(x, wqkv_ref[...],
                  preferred_element_type=jnp.float32) + bqkv_ref[...]

    scale = 1.0 / math.sqrt(HEAD_DIM)
    wo = wo_ref[...]                                   # (H, H)

    # Static per-batch / per-head loops (B*NH = 8 tiny tiles, fully unrolled;
    # static sublane/lane slices avoid in-kernel reshapes/transposes).
    for b in range(BATCH):
        rows = slice(b * SEQ, (b + 1) * SEQ)
        q_b = qkv[rows, 0 * HIDDEN:1 * HIDDEN]         # (S, H)
        k_b = qkv[rows, 1 * HIDDEN:2 * HIDDEN]
        v_b = qkv[rows, 2 * HIDDEN:3 * HIDDEN]

        # Hoisted mask broadcast (once per batch, reused across heads).
        mask_bb = jnp.broadcast_to(mask2d[b:b + 1, :], (SEQ, SEQ))

        # Start the accumulator with residual + output-dense bias; per-head
        # contexts are folded straight into the Wo contraction (no concat).
        acc = x[rows, :] + bo_ref[...]                 # (S, H)

        for h in range(NUM_HEADS):
            cs = slice(h * HEAD_DIM, (h + 1) * HEAD_DIM)
            qh = q_b[:, cs]                            # (S, dh)
            kh = k_b[:, cs]
            vh = v_b[:, cs]

            scores = jnp.dot(qh, kh.T,
                             preferred_element_type=jnp.float32) * scale
            scores = scores + mask_bb
            m = jnp.max(scores, axis=-1, keepdims=True)
            e = jnp.exp(scores - m)
            inv = pl.reciprocal(jnp.sum(e, axis=-1, keepdims=True))
            probs = e * inv                            # (S, S)

            ctx_h = jnp.dot(probs, vh,
                            preferred_element_type=jnp.float32)     # (S, dh)
            acc = acc + jnp.dot(ctx_h, wo[cs, :],
                                preferred_element_type=jnp.float32)  # (S, H)

        # LayerNorm (torch LayerNorm: biased variance).
        mean = jnp.mean(acc, axis=-1, keepdims=True)
        var = jnp.mean((acc - mean) ** 2, axis=-1, keepdims=True)
        y = (acc - mean) * lax.rsqrt(var + LN_EPS)
        out_ref[rows, :] = y * gamma_ref[...] + beta_ref[...]


def quant_bert_attention(hidden_states, attention_mask, params):
    B, S, H = hidden_states.shape
    x2d = hidden_states.reshape(B * S, H)
    mask2d = attention_mask.reshape(B, S)

    # Fuse QKV weights/biases in the wrapper (one-time XLA op, outside kernel).
    w_qkv = jnp.concatenate([params["wq"], params["wk"], params["wv"]], axis=1)
    b_qkv = jnp.concatenate([params["bq"], params["bk"], params["bv"]],
                            axis=0)[None, :]
    bo = params["bo"][None, :]
    gamma = params["gamma"][None, :]
    beta = params["beta"][None, :]

    def full(shape):
        return pl.BlockSpec(shape, lambda i, _shape=shape: (0,) * len(_shape))

    out2d = pl.pallas_call(
        bert_attention_kernel,
        out_shape=jax.ShapeDtypeStruct((B * S, H), jnp.float32),
        grid_spec=pltpu.PrefetchScalarGridSpec(
            num_scalar_prefetch=0,
            grid=(1,),
            in_specs=[
                full((B * S, H)),        # hidden states, flattened
                full((B, S)),            # additive mask
                full((H, 3 * H)),        # fused Wqkv
                full((1, 3 * H)),        # fused bqkv
                full((H, H)),            # Wo
                full((1, H)),            # bo
                full((1, H)),            # gamma
                full((1, H)),            # beta
            ],
            out_specs=full((B * S, H)),
        ),
        compiler_params=pltpu.CompilerParams(
            dimension_semantics=("arbitrary",)),
    )(x2d, mask2d, w_qkv, b_qkv, params["wo"], bo, gamma, beta)
    return out2d.reshape(B, S, H)


def _reference(hidden_states, attention_mask, params):
    """Pure-JAX reference mirroring the torch forward, for sanity checking."""
    x = hidden_states
    q = x @ params["wq"] + params["bq"]
    k = x @ params["wk"] + params["bk"]
    v = x @ params["wv"] + params["bv"]

    def split(t):  # (B,S,H) -> (B,nh,S,dh)
        B, S, _ = t.shape
        return t.reshape(B, S, NUM_HEADS, HEAD_DIM).transpose(0, 2, 1, 3)

    qh, kh, vh = split(q), split(k), split(v)
    scores = jnp.einsum("bhqd,bhkd->bhqk", qh, kh) / math.sqrt(HEAD_DIM)
    scores = scores + attention_mask[:, None, :, :]       # (B,1,1,S) broadcast
    probs = jax.nn.softmax(scores, axis=-1)
    ctx = jnp.einsum("bhqk,bhkd->bhqd", probs, vh)
    ctx = ctx.transpose(0, 2, 1, 3).reshape(x.shape)
    y = ctx @ params["wo"] + params["bo"] + x
    mean = y.mean(-1, keepdims=True)
    var = ((y - mean) ** 2).mean(-1, keepdims=True)
    y = (y - mean) / jnp.sqrt(var + LN_EPS)
    return y * params["gamma"] + params["beta"]


if __name__ == "__main__":
    key = jax.random.PRNGKey(0)
    keys = jax.random.split(key, 12)

    def init_linear(kw, kb, fan_in, fan_out, quantize):
        # torch nn.Linear default init: U(-1/sqrt(fan_in), 1/sqrt(fan_in)).
        bound = 1.0 / math.sqrt(fan_in)
        w = jax.random.uniform(kw, (fan_in, fan_out), jnp.float32, -bound, bound)
        b = jax.random.uniform(kb, (fan_out,), jnp.float32, -bound, bound)
        if quantize:
            w = _dorefa_quantize_weight(w, BITW)
        return w, b

    wq, bq = init_linear(keys[0], keys[1], HIDDEN, HIDDEN, quantize=True)
    wk, bk = init_linear(keys[2], keys[3], HIDDEN, HIDDEN, quantize=True)
    wv, bv = init_linear(keys[4], keys[5], HIDDEN, HIDDEN, quantize=True)
    wo, bo = init_linear(keys[6], keys[7], HIDDEN, HIDDEN, quantize=False)
    params = dict(
        wq=wq, bq=bq, wk=wk, bk=bk, wv=wv, bv=bv, wo=wo, bo=bo,
        gamma=jnp.ones((HIDDEN,), jnp.float32),
        beta=jnp.zeros((HIDDEN,), jnp.float32),
    )

    hidden_states = jax.random.normal(keys[8], (BATCH, SEQ, HIDDEN), jnp.float32)
    # BERT-style additive mask: 0 for visible tokens, -10000 for masked ones.
    key_valid = jax.random.bernoulli(keys[9], 0.9, (BATCH, 1, SEQ))
    attention_mask = jnp.where(key_valid, 0.0, -10000.0).astype(jnp.float32)

    out = quant_bert_attention(hidden_states, attention_mask, params)
    out = jax.block_until_ready(out)

    ref = _reference(hidden_states, attention_mask, params)
    assert jnp.allclose(out, ref, atol=1e-4, rtol=1e-4), "mismatch vs reference"

    print("KERNEL_OK")
</pallas_src>

<mosaic_0001>
module attributes {stable_mosaic.version = 11 : i64} {
  func.func @bert_attention_kernel(%arg0: i32, %arg1: memref<16x32xf32, #tpu.memory_space<vmem>>, %arg2: memref<2x8xf32, #tpu.memory_space<vmem>>, %arg3: memref<32x96xf32, #tpu.memory_space<vmem>>, %arg4: memref<1x96xf32, #tpu.memory_space<vmem>>, %arg5: memref<32x32xf32, #tpu.memory_space<vmem>>, %arg6: memref<1x32xf32, #tpu.memory_space<vmem>>, %arg7: memref<1x32xf32, #tpu.memory_space<vmem>>, %arg8: memref<1x32xf32, #tpu.memory_space<vmem>>, %arg9: memref<16x32xf32, #tpu.memory_space<vmem>>) attributes {dimension_semantics = [#tpu.dimension_semantics<arbitrary>], iteration_bounds = array<i64: 1>, scalar_prefetch = 0 : i64, scratch_operands = 0 : i64, tpu.core_type = #tpu.core_type<tc>, window_params = [{pipeline_mode = #tpu.pipeline_mode<synchronous>, transform_indices = @transform_0, window_bounds = array<i64: 16, 32>}, {pipeline_mode = #tpu.pipeline_mode<synchronous>, transform_indices = @transform_1, window_bounds = array<i64: 2, 8>}, {pipeline_mode = #tpu.pipeline_mode<synchronous>, transform_indices = @transform_2, window_bounds = array<i64: 32, 96>}, {pipeline_mode = #tpu.pipeline_mode<synchronous>, transform_indices = @transform_3, window_bounds = array<i64: 1, 96>}, {pipeline_mode = #tpu.pipeline_mode<synchronous>, transform_indices = @transform_4, window_bounds = array<i64: 32, 32>}, {pipeline_mode = #tpu.pipeline_mode<synchronous>, transform_indices = @transform_5, window_bounds = array<i64: 1, 32>}, {pipeline_mode = #tpu.pipeline_mode<synchronous>, transform_indices = @transform_6, window_bounds = array<i64: 1, 32>}, {pipeline_mode = #tpu.pipeline_mode<synchronous>, transform_indices = @transform_7, window_bounds = array<i64: 1, 32>}, {pipeline_mode = #tpu.pipeline_mode<synchronous>, transform_indices = @transform_8, window_bounds = array<i64: 16, 32>}]} {
    %c0 = arith.constant 0 : index
    %c0_0 = arith.constant 0 : index
    %0 = vector.load %arg1[%c0, %c0_0] : memref<16x32xf32, #tpu.memory_space<vmem>>, vector<16x32xf32>
    %c0_1 = arith.constant 0 : index
    %c0_2 = arith.constant 0 : index
    %1 = vector.load %arg2[%c0_1, %c0_2] : memref<2x8xf32, #tpu.memory_space<vmem>>, vector<2x8xf32>
    %c0_3 = arith.constant 0 : index
    %c0_4 = arith.constant 0 : index
    %2 = vector.load %arg3[%c0_3, %c0_4] : memref<32x96xf32, #tpu.memory_space<vmem>>, vector<32x96xf32>
    %cst = arith.constant dense<0.000000e+00> : vector<16x96xf32>
    %3 = tpu.matmul %0, %2, %cst {dimension_numbers = #tpu.dot_dimension_numbers<[1], [0], [0], [1], [0, 0, 1, 1], [], []>} : vector<16x32xf32>, vector<32x96xf32>, vector<16x96xf32> -> vector<16x96xf32>
    %c0_5 = arith.constant 0 : index
    %c0_6 = arith.constant 0 : index
    %4 = vector.load %arg4[%c0_5, %c0_6] : memref<1x96xf32, #tpu.memory_space<vmem>>, vector<1x96xf32>
    %5 = vector.broadcast %4 : vector<1x96xf32> to vector<16x96xf32>
    %6 = arith.addf %3, %5 : vector<16x96xf32>
    %c0_7 = arith.constant 0 : index
    %c0_8 = arith.constant 0 : index
    %7 = vector.load %arg5[%c0_7, %c0_8] : memref<32x32xf32, #tpu.memory_space<vmem>>, vector<32x32xf32>
    %8 = vector.extract_strided_slice %6 {offsets = [0, 0], sizes = [8, 32], strides = [1, 1]} : vector<16x96xf32> to vector<8x32xf32>
    %9 = vector.extract_strided_slice %6 {offsets = [0, 32], sizes = [8, 32], strides = [1, 1]} : vector<16x96xf32> to vector<8x32xf32>
    %10 = vector.extract_strided_slice %6 {offsets = [0, 64], sizes = [8, 32], strides = [1, 1]} : vector<16x96xf32> to vector<8x32xf32>
    %11 = vector.extract_strided_slice %1 {offsets = [0, 0], sizes = [1, 8], strides = [1, 1]} : vector<2x8xf32> to vector<1x8xf32>
    %12 = vector.shape_cast %11 : vector<1x8xf32> to vector<1x8xf32>
    %13 = vector.broadcast %12 : vector<1x8xf32> to vector<8x8xf32>
    %14 = vector.extract_strided_slice %0 {offsets = [0, 0], sizes = [8, 32], strides = [1, 1]} : vector<16x32xf32> to vector<8x32xf32>
    %c0_9 = arith.constant 0 : index
    %c0_10 = arith.constant 0 : index
    %15 = vector.load %arg6[%c0_9, %c0_10] : memref<1x32xf32, #tpu.memory_space<vmem>>, vector<1x32xf32>
    %16 = vector.broadcast %15 : vector<1x32xf32> to vector<8x32xf32>
    %17 = arith.addf %14, %16 : vector<8x32xf32>
    %18 = vector.extract_strided_slice %8 {offsets = [0, 0], sizes = [8, 8], strides = [1, 1]} : vector<8x32xf32> to vector<8x8xf32>
    %19 = vector.extract_strided_slice %9 {offsets = [0, 0], sizes = [8, 8], strides = [1, 1]} : vector<8x32xf32> to vector<8x8xf32>
    %20 = vector.extract_strided_slice %10 {offsets = [0, 0], sizes = [8, 8], strides = [1, 1]} : vector<8x32xf32> to vector<8x8xf32>
    %21 = tpu.transpose %19, [1, 0] : vector<8x8xf32> -> vector<8x8xf32>
    %cst_11 = arith.constant dense<0.000000e+00> : vector<8x8xf32>
    %22 = tpu.matmul %18, %21, %cst_11 {dimension_numbers = #tpu.dot_dimension_numbers<[1], [0], [0], [1], [0, 0, 1, 1], [], []>} : vector<8x8xf32>, vector<8x8xf32>, vector<8x8xf32> -> vector<8x8xf32>
    %cst_12 = arith.constant 0.353553385 : f32
    %23 = vector.broadcast %cst_12 : f32 to vector<8x8xf32>
    %24 = arith.mulf %22, %23 : vector<8x8xf32>
    %25 = arith.addf %24, %13 : vector<8x8xf32>
    %cst_13 = arith.constant dense<0xFF800000> : vector<8xf32>
    %26 = vector.multi_reduction <maximumf>, %25, %cst_13 [1] : vector<8x8xf32> to vector<8xf32>
    %27 = vector.shape_cast %26 : vector<8xf32> to vector<8x1xf32>
    %28 = vector.broadcast %27 : vector<8x1xf32> to vector<8x8xf32>
    %29 = arith.subf %25, %28 : vector<8x8xf32>
    %30 = math.exp %29 : vector<8x8xf32>
    %cst_14 = arith.constant dense<0.000000e+00> : vector<8xf32>
    %31 = vector.multi_reduction <add>, %30, %cst_14 [1] : vector<8x8xf32> to vector<8xf32>
    %32 = vector.shape_cast %31 : vector<8xf32> to vector<8x1xf32>
    %33 = tpu.reciprocal %32 : vector<8x1xf32> -> vector<8x1xf32>
    %34 = vector.broadcast %33 : vector<8x1xf32> to vector<8x8xf32>
    %35 = arith.mulf %30, %34 : vector<8x8xf32>
    %cst_15 = arith.constant dense<0.000000e+00> : vector<8x8xf32>
    %36 = tpu.matmul %35, %20, %cst_15 {dimension_numbers = #tpu.dot_dimension_numbers<[1], [0], [0], [1], [0, 0, 1, 1], [], []>} : vector<8x8xf32>, vector<8x8xf32>, vector<8x8xf32> -> vector<8x8xf32>
    %37 = vector.extract_strided_slice %7 {offsets = [0, 0], sizes = [8, 32], strides = [1, 1]} : vector<32x32xf32> to vector<8x32xf32>
    %cst_16 = arith.constant dense<0.000000e+00> : vector<8x32xf32>
    %38 = tpu.matmul %36, %37, %cst_16 {dimension_numbers = #tpu.dot_dimension_numbers<[1], [0], [0], [1], [0, 0, 1, 1], [], []>} : vector<8x8xf32>, vector<8x32xf32>, vector<8x32xf32> -> vector<8x32xf32>
    %39 = arith.addf %17, %38 : vector<8x32xf32>
    %40 = vector.extract_strided_slice %8 {offsets = [0, 8], sizes = [8, 8], strides = [1, 1]} : vector<8x32xf32> to vector<8x8xf32>
    %41 = vector.extract_strided_slice %9 {offsets = [0, 8], sizes = [8, 8], strides = [1, 1]} : vector<8x32xf32> to vector<8x8xf32>
    %42 = vector.extract_strided_slice %10 {offsets = [0, 8], sizes = [8, 8], strides = [1, 1]} : vector<8x32xf32> to vector<8x8xf32>
    %43 = tpu.transpose %41, [1, 0] : vector<8x8xf32> -> vector<8x8xf32>
    %cst_17 = arith.constant dense<0.000000e+00> : vector<8x8xf32>
    %44 = tpu.matmul %40, %43, %cst_17 {dimension_numbers = #tpu.dot_dimension_numbers<[1], [0], [0], [1], [0, 0, 1, 1], [], []>} : vector<8x8xf32>, vector<8x8xf32>, vector<8x8xf32> -> vector<8x8xf32>
    %cst_18 = arith.constant 0.353553385 : f32
    %45 = vector.broadcast %cst_18 : f32 to vector<8x8xf32>
    %46 = arith.mulf %44, %45 : vector<8x8xf32>
    %47 = arith.addf %46, %13 : vector<8x8xf32>
    %cst_19 = arith.constant dense<0xFF800000> : vector<8xf32>
    %48 = vector.multi_reduction <maximumf>, %47, %cst_19 [1] : vector<8x8xf32> to vector<8xf32>
    %49 = vector.shape_cast %48 : vector<8xf32> to vector<8x1xf32>
    %50 = vector.broadcast %49 : vector<8x1xf32> to vector<8x8xf32>
    %51 = arith.subf %47, %50 : vector<8x8xf32>
    %52 = math.exp %51 : vector<8x8xf32>
    %cst_20 = arith.constant dense<0.000000e+00> : vector<8xf32>
    %53 = vector.multi_reduction <add>, %52, %cst_20 [1] : vector<8x8xf32> to vector<8xf32>
    %54 = vector.shape_cast %53 : vector<8xf32> to vector<8x1xf32>
    %55 = tpu.reciprocal %54 : vector<8x1xf32> -> vector<8x1xf32>
    %56 = vector.broadcast %55 : vector<8x1xf32> to vector<8x8xf32>
    %57 = arith.mulf %52, %56 : vector<8x8xf32>
    %cst_21 = arith.constant dense<0.000000e+00> : vector<8x8xf32>
    %58 = tpu.matmul %57, %42, %cst_21 {dimension_numbers = #tpu.dot_dimension_numbers<[1], [0], [0], [1], [0, 0, 1, 1], [], []>} : vector<8x8xf32>, vector<8x8xf32>, vector<8x8xf32> -> vector<8x8xf32>
    %59 = vector.extract_strided_slice %7 {offsets = [8, 0], sizes = [8, 32], strides = [1, 1]} : vector<32x32xf32> to vector<8x32xf32>
    %cst_22 = arith.constant dense<0.000000e+00> : vector<8x32xf32>
    %60 = tpu.matmul %58, %59, %cst_22 {dimension_numbers = #tpu.dot_dimension_numbers<[1], [0], [0], [1], [0, 0, 1, 1], [], []>} : vector<8x8xf32>, vector<8x32xf32>, vector<8x32xf32> -> vector<8x32xf32>
    %61 = arith.addf %39, %60 : vector<8x32xf32>
    %62 = vector.extract_strided_slice %8 {offsets = [0, 16], sizes = [8, 8], strides = [1, 1]} : vector<8x32xf32> to vector<8x8xf32>
    %63 = vector.extract_strided_slice %9 {offsets = [0, 16], sizes = [8, 8], strides = [1, 1]} : vector<8x32xf32> to vector<8x8xf32>
    %64 = vector.extract_strided_slice %10 {offsets = [0, 16], sizes = [8, 8], strides = [1, 1]} : vector<8x32xf32> to vector<8x8xf32>
    %65 = tpu.transpose %63, [1, 0] : vector<8x8xf32> -> vector<8x8xf32>
    %cst_23 = arith.constant dense<0.000000e+00> : vector<8x8xf32>
    %66 = tpu.matmul %62, %65, %cst_23 {dimension_numbers = #tpu.dot_dimension_numbers<[1], [0], [0], [1], [0, 0, 1, 1], [], []>} : vector<8x8xf32>, vector<8x8xf32>, vector<8x8xf32> -> vector<8x8xf32>
    %cst_24 = arith.constant 0.353553385 : f32
    %67 = vector.broadcast %cst_24 : f32 to vector<8x8xf32>
    %68 = arith.mulf %66, %67 : vector<8x8xf32>
    %69 = arith.addf %68, %13 : vector<8x8xf32>
    %cst_25 = arith.constant dense<0xFF800000> : vector<8xf32>
    %70 = vector.multi_reduction <maximumf>, %69, %cst_25 [1] : vector<8x8xf32> to vector<8xf32>
    %71 = vector.shape_cast %70 : vector<8xf32> to vector<8x1xf32>
    %72 = vector.broadcast %71 : vector<8x1xf32> to vector<8x8xf32>
    %73 = arith.subf %69, %72 : vector<8x8xf32>
    %74 = math.exp %73 : vector<8x8xf32>
    %cst_26 = arith.constant dense<0.000000e+00> : vector<8xf32>
    %75 = vector.multi_reduction <add>, %74, %cst_26 [1] : vector<8x8xf32> to vector<8xf32>
    %76 = vector.shape_cast %75 : vector<8xf32> to vector<8x1xf32>
    %77 = tpu.reciprocal %76 : vector<8x1xf32> -> vector<8x1xf32>
    %78 = vector.broadcast %77 : vector<8x1xf32> to vector<8x8xf32>
    %79 = arith.mulf %74, %78 : vector<8x8xf32>
    %cst_27 = arith.constant dense<0.000000e+00> : vector<8x8xf32>
    %80 = tpu.matmul %79, %64, %cst_27 {dimension_numbers = #tpu.dot_dimension_numbers<[1], [0], [0], [1], [0, 0, 1, 1], [], []>} : vector<8x8xf32>, vector<8x8xf32>, vector<8x8xf32> -> vector<8x8xf32>
    %81 = vector.extract_strided_slice %7 {offsets = [16, 0], sizes = [8, 32], strides = [1, 1]} : vector<32x32xf32> to vector<8x32xf32>
    %cst_28 = arith.constant dense<0.000000e+00> : vector<8x32xf32>
    %82 = tpu.matmul %80, %81, %cst_28 {dimension_numbers = #tpu.dot_dimension_numbers<[1], [0], [0], [1], [0, 0, 1, 1], [], []>} : vector<8x8xf32>, vector<8x32xf32>, vector<8x32xf32> -> vector<8x32xf32>
    %83 = arith.addf %61, %82 : vector<8x32xf32>
    %84 = vector.extract_strided_slice %8 {offsets = [0, 24], sizes = [8, 8], strides = [1, 1]} : vector<8x32xf32> to vector<8x8xf32>
    %85 = vector.extract_strided_slice %9 {offsets = [0, 24], sizes = [8, 8], strides = [1, 1]} : vector<8x32xf32> to vector<8x8xf32>
    %86 = vector.extract_strided_slice %10 {offsets = [0, 24], sizes = [8, 8], strides = [1, 1]} : vector<8x32xf32> to vector<8x8xf32>
    %87 = tpu.transpose %85, [1, 0] : vector<8x8xf32> -> vector<8x8xf32>
    %cst_29 = arith.constant dense<0.000000e+00> : vector<8x8xf32>
    %88 = tpu.matmul %84, %87, %cst_29 {dimension_numbers = #tpu.dot_dimension_numbers<[1], [0], [0], [1], [0, 0, 1, 1], [], []>} : vector<8x8xf32>, vector<8x8xf32>, vector<8x8xf32> -> vector<8x8xf32>
    %cst_30 = arith.constant 0.353553385 : f32
    %89 = vector.broadcast %cst_30 : f32 to vector<8x8xf32>
    %90 = arith.mulf %88, %89 : vector<8x8xf32>
    %91 = arith.addf %90, %13 : vector<8x8xf32>
    %cst_31 = arith.constant dense<0xFF800000> : vector<8xf32>
    %92 = vector.multi_reduction <maximumf>, %91, %cst_31 [1] : vector<8x8xf32> to vector<8xf32>
    %93 = vector.shape_cast %92 : vector<8xf32> to vector<8x1xf32>
    %94 = vector.broadcast %93 : vector<8x1xf32> to vector<8x8xf32>
    %95 = arith.subf %91, %94 : vector<8x8xf32>
    %96 = math.exp %95 : vector<8x8xf32>
    %cst_32 = arith.constant dense<0.000000e+00> : vector<8xf32>
    %97 = vector.multi_reduction <add>, %96, %cst_32 [1] : vector<8x8xf32> to vector<8xf32>
    %98 = vector.shape_cast %97 : vector<8xf32> to vector<8x1xf32>
    %99 = tpu.reciprocal %98 : vector<8x1xf32> -> vector<8x1xf32>
    %100 = vector.broadcast %99 : vector<8x1xf32> to vector<8x8xf32>
    %101 = arith.mulf %96, %100 : vector<8x8xf32>
    %cst_33 = arith.constant dense<0.000000e+00> : vector<8x8xf32>
    %102 = tpu.matmul %101, %86, %cst_33 {dimension_numbers = #tpu.dot_dimension_numbers<[1], [0], [0], [1], [0, 0, 1, 1], [], []>} : vector<8x8xf32>, vector<8x8xf32>, vector<8x8xf32> -> vector<8x8xf32>
    %103 = vector.extract_strided_slice %7 {offsets = [24, 0], sizes = [8, 32], strides = [1, 1]} : vector<32x32xf32> to vector<8x32xf32>
    %cst_34 = arith.constant dense<0.000000e+00> : vector<8x32xf32>
    %104 = tpu.matmul %102, %103, %cst_34 {dimension_numbers = #tpu.dot_dimension_numbers<[1], [0], [0], [1], [0, 0, 1, 1], [], []>} : vector<8x8xf32>, vector<8x32xf32>, vector<8x32xf32> -> vector<8x32xf32>
    %105 = arith.addf %83, %104 : vector<8x32xf32>
    %cst_35 = arith.constant dense<0.000000e+00> : vector<8xf32>
    %106 = vector.multi_reduction <add>, %105, %cst_35 [1] : vector<8x32xf32> to vector<8xf32>
    %107 = vector.shape_cast %106 : vector<8xf32> to vector<8x1xf32>
    %cst_36 = arith.constant 3.200000e+01 : f32
    %108 = vector.broadcast %cst_36 : f32 to vector<8x1xf32>
    %109 = arith.divf %107, %108 : vector<8x1xf32>
    %110 = vector.broadcast %109 : vector<8x1xf32> to vector<8x32xf32>
    %111 = arith.subf %105, %110 : vector<8x32xf32>
    %112 = arith.mulf %111, %111 : vector<8x32xf32>
    %cst_37 = arith.constant dense<0.000000e+00> : vector<8xf32>
    %113 = vector.multi_reduction <add>, %112, %cst_37 [1] : vector<8x32xf32> to vector<8xf32>
    %114 = vector.shape_cast %113 : vector<8xf32> to vector<8x1xf32>
    %cst_38 = arith.constant 3.200000e+01 : f32
    %115 = vector.broadcast %cst_38 : f32 to vector<8x1xf32>
    %116 = arith.divf %114, %115 : vector<8x1xf32>
    %117 = vector.broadcast %109 : vector<8x1xf32> to vector<8x32xf32>
    %118 = arith.subf %105, %117 : vector<8x32xf32>
    %cst_39 = arith.constant 9.99999996E-13 : f32
    %119 = vector.broadcast %cst_39 : f32 to vector<8x1xf32>
    %120 = arith.addf %116, %119 : vector<8x1xf32>
    %121 = math.rsqrt %120 : vector<8x1xf32>
    %122 = vector.broadcast %121 : vector<8x1xf32> to vector<8x32xf32>
    %123 = arith.mulf %118, %122 : vector<8x32xf32>
    %c0_40 = arith.constant 0 : index
    %c0_41 = arith.constant 0 : index
    %124 = vector.load %arg7[%c0_40, %c0_41] : memref<1x32xf32, #tpu.memory_space<vmem>>, vector<1x32xf32>
    %125 = vector.broadcast %124 : vector<1x32xf32> to vector<8x32xf32>
    %126 = arith.mulf %123, %125 : vector<8x32xf32>
    %c0_42 = arith.constant 0 : index
    %c0_43 = arith.constant 0 : index
    %127 = vector.load %arg8[%c0_42, %c0_43] : memref<1x32xf32, #tpu.memory_space<vmem>>, vector<1x32xf32>
    %128 = vector.broadcast %127 : vector<1x32xf32> to vector<8x32xf32>
    %129 = arith.addf %126, %128 : vector<8x32xf32>
    %c0_44 = arith.constant 0 : index
    %c0_45 = arith.constant 0 : index
    %130 = vector.load %arg9[%c0_44, %c0_45] : memref<16x32xf32, #tpu.memory_space<vmem>>, vector<8x32xf32>
    tpu.vector_store %arg9[%c0_44, %c0_45], %129 {strides = array<i32>} : memref<16x32xf32, #tpu.memory_space<vmem>>, vector<8x32xf32>,
    %131 = vector.extract_strided_slice %6 {offsets = [8, 0], sizes = [8, 32], strides = [1, 1]} : vector<16x96xf32> to vector<8x32xf32>
    %132 = vector.extract_strided_slice %6 {offsets = [8, 32], sizes = [8, 32], strides = [1, 1]} : vector<16x96xf32> to vector<8x32xf32>
    %133 = vector.extract_strided_slice %6 {offsets = [8, 64], sizes = [8, 32], strides = [1, 1]} : vector<16x96xf32> to vector<8x32xf32>
    %134 = vector.extract_strided_slice %1 {offsets = [1, 0], sizes = [1, 8], strides = [1, 1]} : vector<2x8xf32> to vector<1x8xf32>
    %135 = vector.shape_cast %134 : vector<1x8xf32> to vector<1x8xf32>
    %136 = vector.broadcast %135 : vector<1x8xf32> to vector<8x8xf32>
    %137 = vector.extract_strided_slice %0 {offsets = [8, 0], sizes = [8, 32], strides = [1, 1]} : vector<16x32xf32> to vector<8x32xf32>
    %c0_46 = arith.constant 0 : index
    %c0_47 = arith.constant 0 : index
    %138 = vector.load %arg6[%c0_46, %c0_47] : memref<1x32xf32, #tpu.memory_space<vmem>>, vector<1x32xf32>
    %139 = vector.broadcast %138 : vector<1x32xf32> to vector<8x32xf32>
    %140 = arith.addf %137, %139 : vector<8x32xf32>
    %141 = vector.extract_strided_slice %131 {offsets = [0, 0], sizes = [8, 8], strides = [1, 1]} : vector<8x32xf32> to vector<8x8xf32>
    %142 = vector.extract_strided_slice %132 {offsets = [0, 0], sizes = [8, 8], strides = [1, 1]} : vector<8x32xf32> to vector<8x8xf32>
    %143 = vector.extract_strided_slice %133 {offsets = [0, 0], sizes = [8, 8], strides = [1, 1]} : vector<8x32xf32> to vector<8x8xf32>
    %144 = tpu.transpose %142, [1, 0] : vector<8x8xf32> -> vector<8x8xf32>
    %cst_48 = arith.constant dense<0.000000e+00> : vector<8x8xf32>
    %145 = tpu.matmul %141, %144, %cst_48 {dimension_numbers = #tpu.dot_dimension_numbers<[1], [0], [0], [1], [0, 0, 1, 1], [], []>} : vector<8x8xf32>, vector<8x8xf32>, vector<8x8xf32> -> vector<8x8xf32>
    %cst_49 = arith.constant 0.353553385 : f32
    %146 = vector.broadcast %cst_49 : f32 to vector<8x8xf32>
    %147 = arith.mulf %145, %146 : vector<8x8xf32>
    %148 = arith.addf %147, %136 : vector<8x8xf32>
    %cst_50 = arith.constant dense<0xFF800000> : vector<8xf32>
    %149 = vector.multi_reduction <maximumf>, %148, %cst_50 [1] : vector<8x8xf32> to vector<8xf32>
    %150 = vector.shape_cast %149 : vector<8xf32> to vector<8x1xf32>
    %151 = vector.broadcast %150 : vector<8x1xf32> to vector<8x8xf32>
    %152 = arith.subf %148, %151 : vector<8x8xf32>
    %153 = math.exp %152 : vector<8x8xf32>
    %cst_51 = arith.constant dense<0.000000e+00> : vector<8xf32>
    %154 = vector.multi_reduction <add>, %153, %cst_51 [1] : vector<8x8xf32> to vector<8xf32>
    %155 = vector.shape_cast %154 : vector<8xf32> to vector<8x1xf32>
    %156 = tpu.reciprocal %155 : vector<8x1xf32> -> vector<8x1xf32>
    %157 = vector.broadcast %156 : vector<8x1xf32> to vector<8x8xf32>
    %158 = arith.mulf %153, %157 : vector<8x8xf32>
    %cst_52 = arith.constant dense<0.000000e+00> : vector<8x8xf32>
    %159 = tpu.matmul %158, %143, %cst_52 {dimension_numbers = #tpu.dot_dimension_numbers<[1], [0], [0], [1], [0, 0, 1, 1], [], []>} : vector<8x8xf32>, vector<8x8xf32>, vector<8x8xf32> -> vector<8x8xf32>
    %160 = vector.extract_strided_slice %7 {offsets = [0, 0], sizes = [8, 32], strides = [1, 1]} : vector<32x32xf32> to vector<8x32xf32>
    %cst_53 = arith.constant dense<0.000000e+00> : vector<8x32xf32>
    %161 = tpu.matmul %159, %160, %cst_53 {dimension_numbers = #tpu.dot_dimension_numbers<[1], [0], [0], [1], [0, 0, 1, 1], [], []>} : vector<8x8xf32>, vector<8x32xf32>, vector<8x32xf32> -> vector<8x32xf32>
    %162 = arith.addf %140, %161 : vector<8x32xf32>
    %163 = vector.extract_strided_slice %131 {offsets = [0, 8], sizes = [8, 8], strides = [1, 1]} : vector<8x32xf32> to vector<8x8xf32>
    %164 = vector.extract_strided_slice %132 {offsets = [0, 8], sizes = [8, 8], strides = [1, 1]} : vector<8x32xf32> to vector<8x8xf32>
    %165 = vector.extract_strided_slice %133 {offsets = [0, 8], sizes = [8, 8], strides = [1, 1]} : vector<8x32xf32> to vector<8x8xf32>
    %166 = tpu.transpose %164, [1, 0] : vector<8x8xf32> -> vector<8x8xf32>
    %cst_54 = arith.constant dense<0.000000e+00> : vector<8x8xf32>
    %167 = tpu.matmul %163, %166, %cst_54 {dimension_numbers = #tpu.dot_dimension_numbers<[1], [0], [0], [1], [0, 0, 1, 1], [], []>} : vector<8x8xf32>, vector<8x8xf32>, vector<8x8xf32> -> vector<8x8xf32>
    %cst_55 = arith.constant 0.353553385 : f32
    %168 = vector.broadcast %cst_55 : f32 to vector<8x8xf32>
    %169 = arith.mulf %167, %168 : vector<8x8xf32>
    %170 = arith.addf %169, %136 : vector<8x8xf32>
    %cst_56 = arith.constant dense<0xFF800000> : vector<8xf32>
    %171 = vector.multi_reduction <maximumf>, %170, %cst_56 [1] : vector<8x8xf32> to vector<8xf32>
    %172 = vector.shape_cast %171 : vector<8xf32> to vector<8x1xf32>
    %173 = vector.broadcast %172 : vector<8x1xf32> to vector<8x8xf32>
    %174 = arith.subf %170, %173 : vector<8x8xf32>
    %175 = math.exp %174 : vector<8x8xf32>
    %cst_57 = arith.constant dense<0.000000e+00> : vector<8xf32>
    %176 = vector.multi_reduction <add>, %175, %cst_57 [1] : vector<8x8xf32> to vector<8xf32>
    %177 = vector.shape_cast %176 : vector<8xf32> to vector<8x1xf32>
    %178 = tpu.reciprocal %177 : vector<8x1xf32> -> vector<8x1xf32>
    %179 = vector.broadcast %178 : vector<8x1xf32> to vector<8x8xf32>
    %180 = arith.mulf %175, %179 : vector<8x8xf32>
    %cst_58 = arith.constant dense<0.000000e+00> : vector<8x8xf32>
    %181 = tpu.matmul %180, %165, %cst_58 {dimension_numbers = #tpu.dot_dimension_numbers<[1], [0], [0], [1], [0, 0, 1, 1], [], []>} : vector<8x8xf32>, vector<8x8xf32>, vector<8x8xf32> -> vector<8x8xf32>
    %182 = vector.extract_strided_slice %7 {offsets = [8, 0], sizes = [8, 32], strides = [1, 1]} : vector<32x32xf32> to vector<8x32xf32>
    %cst_59 = arith.constant dense<0.000000e+00> : vector<8x32xf32>
    %183 = tpu.matmul %181, %182, %cst_59 {dimension_numbers = #tpu.dot_dimension_numbers<[1], [0], [0], [1], [0, 0, 1, 1], [], []>} : vector<8x8xf32>, vector<8x32xf32>, vector<8x32xf32> -> vector<8x32xf32>
    %184 = arith.addf %162, %183 : vector<8x32xf32>
    %185 = vector.extract_strided_slice %131 {offsets = [0, 16], sizes = [8, 8], strides = [1, 1]} : vector<8x32xf32> to vector<8x8xf32>
    %186 = vector.extract_strided_slice %132 {offsets = [0, 16], sizes = [8, 8], strides = [1, 1]} : vector<8x32xf32> to vector<8x8xf32>
    %187 = vector.extract_strided_slice %133 {offsets = [0, 16], sizes = [8, 8], strides = [1, 1]} : vector<8x32xf32> to vector<8x8xf32>
    %188 = tpu.transpose %186, [1, 0] : vector<8x8xf32> -> vector<8x8xf32>
    %cst_60 = arith.constant dense<0.000000e+00> : vector<8x8xf32>
    %189 = tpu.matmul %185, %188, %cst_60 {dimension_numbers = #tpu.dot_dimension_numbers<[1], [0], [0], [1], [0, 0, 1, 1], [], []>} : vector<8x8xf32>, vector<8x8xf32>, vector<8x8xf32> -> vector<8x8xf32>
    %cst_61 = arith.constant 0.353553385 : f32
    %190 = vector.broadcast %cst_61 : f32 to vector<8x8xf32>
    %191 = arith.mulf %189, %190 : vector<8x8xf32>
    %192 = arith.addf %191, %136 : vector<8x8xf32>
    %cst_62 = arith.constant dense<0xFF800000> : vector<8xf32>
    %193 = vector.multi_reduction <maximumf>, %192, %cst_62 [1] : vector<8x8xf32> to vector<8xf32>
    %194 = vector.shape_cast %193 : vector<8xf32> to vector<8x1xf32>
    %195 = vector.broadcast %194 : vector<8x1xf32> to vector<8x8xf32>
    %196 = arith.subf %192, %195 : vector<8x8xf32>
    %197 = math.exp %196 : vector<8x8xf32>
    %cst_63 = arith.constant dense<0.000000e+00> : vector<8xf32>
    %198 = vector.multi_reduction <add>, %197, %cst_63 [1] : vector<8x8xf32> to vector<8xf32>
    %199 = vector.shape_cast %198 : vector<8xf32> to vector<8x1xf32>
    %200 = tpu.reciprocal %199 : vector<8x1xf32> -> vector<8x1xf32>
    %201 = vector.broadcast %200 : vector<8x1xf32> to vector<8x8xf32>
    %202 = arith.mulf %197, %201 : vector<8x8xf32>
    %cst_64 = arith.constant dense<0.000000e+00> : vector<8x8xf32>
    %203 = tpu.matmul %202, %187, %cst_64 {dimension_numbers = #tpu.dot_dimension_numbers<[1], [0], [0], [1], [0, 0, 1, 1], [], []>} : vector<8x8xf32>, vector<8x8xf32>, vector<8x8xf32> -> vector<8x8xf32>
    %204 = vector.extract_strided_slice %7 {offsets = [16, 0], sizes = [8, 32], strides = [1, 1]} : vector<32x32xf32> to vector<8x32xf32>
    %cst_65 = arith.constant dense<0.000000e+00> : vector<8x32xf32>
    %205 = tpu.matmul %203, %204, %cst_65 {dimension_numbers = #tpu.dot_dimension_numbers<[1], [0], [0], [1], [0, 0, 1, 1], [], []>} : vector<8x8xf32>, vector<8x32xf32>, vector<8x32xf32> -> vector<8x32xf32>
    %206 = arith.addf %184, %205 : vector<8x32xf32>
    %207 = vector.extract_strided_slice %131 {offsets = [0, 24], sizes = [8, 8], strides = [1, 1]} : vector<8x32xf32> to vector<8x8xf32>
    %208 = vector.extract_strided_slice %132 {offsets = [0, 24], sizes = [8, 8], strides = [1, 1]} : vector<8x32xf32> to vector<8x8xf32>
    %209 = vector.extract_strided_slice %133 {offsets = [0, 24], sizes = [8, 8], strides = [1, 1]} : vector<8x32xf32> to vector<8x8xf32>
    %210 = tpu.transpose %208, [1, 0] : vector<8x8xf32> -> vector<8x8xf32>
    %cst_66 = arith.constant dense<0.000000e+00> : vector<8x8xf32>
    %211 = tpu.matmul %207, %210, %cst_66 {dimension_numbers = #tpu.dot_dimension_numbers<[1], [0], [0], [1], [0, 0, 1, 1], [], []>} : vector<8x8xf32>, vector<8x8xf32>, vector<8x8xf32> -> vector<8x8xf32>
    %cst_67 = arith.constant 0.353553385 : f32
    %212 = vector.broadcast %cst_67 : f32 to vector<8x8xf32>
    %213 = arith.mulf %211, %212 : vector<8x8xf32>
    %214 = arith.addf %213, %136 : vector<8x8xf32>
    %cst_68 = arith.constant dense<0xFF800000> : vector<8xf32>
    %215 = vector.multi_reduction <maximumf>, %214, %cst_68 [1] : vector<8x8xf32> to vector<8xf32>
    %216 = vector.shape_cast %215 : vector<8xf32> to vector<8x1xf32>
    %217 = vector.broadcast %216 : vector<8x1xf32> to vector<8x8xf32>
    %218 = arith.subf %214, %217 : vector<8x8xf32>
    %219 = math.exp %218 : vector<8x8xf32>
    %cst_69 = arith.constant dense<0.000000e+00> : vector<8xf32>
    %220 = vector.multi_reduction <add>, %219, %cst_69 [1] : vector<8x8xf32> to vector<8xf32>
    %221 = vector.shape_cast %220 : vector<8xf32> to vector<8x1xf32>
    %222 = tpu.reciprocal %221 : vector<8x1xf32> -> vector<8x1xf32>
    %223 = vector.broadcast %222 : vector<8x1xf32> to vector<8x8xf32>
    %224 = arith.mulf %219, %223 : vector<8x8xf32>
    %cst_70 = arith.constant dense<0.000000e+00> : vector<8x8xf32>
    %225 = tpu.matmul %224, %209, %cst_70 {dimension_numbers = #tpu.dot_dimension_numbers<[1], [0], [0], [1], [0, 0, 1, 1], [], []>} : vector<8x8xf32>, vector<8x8xf32>, vector<8x8xf32> -> vector<8x8xf32>
    %226 = vector.extract_strided_slice %7 {offsets = [24, 0], sizes = [8, 32], strides = [1, 1]} : vector<32x32xf32> to vector<8x32xf32>
    %cst_71 = arith.constant dense<0.000000e+00> : vector<8x32xf32>
    %227 = tpu.matmul %225, %226, %cst_71 {dimension_numbers = #tpu.dot_dimension_numbers<[1], [0], [0], [1], [0, 0, 1, 1], [], []>} : vector<8x8xf32>, vector<8x32xf32>, vector<8x32xf32> -> vector<8x32xf32>
    %228 = arith.addf %206, %227 : vector<8x32xf32>
    %cst_72 = arith.constant dense<0.000000e+00> : vector<8xf32>
    %229 = vector.multi_reduction <add>, %228, %cst_72 [1] : vector<8x32xf32> to vector<8xf32>
    %230 = vector.shape_cast %229 : vector<8xf32> to vector<8x1xf32>
    %cst_73 = arith.constant 3.200000e+01 : f32
    %231 = vector.broadcast %cst_73 : f32 to vector<8x1xf32>
    %232 = arith.divf %230, %231 : vector<8x1xf32>
    %233 = vector.broadcast %232 : vector<8x1xf32> to vector<8x32xf32>
    %234 = arith.subf %228, %233 : vector<8x32xf32>
    %235 = arith.mulf %234, %234 : vector<8x32xf32>
    %cst_74 = arith.constant dense<0.000000e+00> : vector<8xf32>
    %236 = vector.multi_reduction <add>, %235, %cst_74 [1] : vector<8x32xf32> to vector<8xf32>
    %237 = vector.shape_cast %236 : vector<8xf32> to vector<8x1xf32>
    %cst_75 = arith.constant 3.200000e+01 : f32
    %238 = vector.broadcast %cst_75 : f32 to vector<8x1xf32>
    %239 = arith.divf %237, %238 : vector<8x1xf32>
    %240 = vector.broadcast %232 : vector<8x1xf32> to vector<8x32xf32>
    %241 = arith.subf %228, %240 : vector<8x32xf32>
    %cst_76 = arith.constant 9.99999996E-13 : f32
    %242 = vector.broadcast %cst_76 : f32 to vector<8x1xf32>
    %243 = arith.addf %239, %242 : vector<8x1xf32>
    %244 = math.rsqrt %243 : vector<8x1xf32>
    %245 = vector.broadcast %244 : vector<8x1xf32> to vector<8x32xf32>
    %246 = arith.mulf %241, %245 : vector<8x32xf32>
    %c0_77 = arith.constant 0 : index
    %c0_78 = arith.constant 0 : index
    %247 = vector.load %arg7[%c0_77, %c0_78] : memref<1x32xf32, #tpu.memory_space<vmem>>, vector<1x32xf32>
    %248 = vector.broadcast %247 : vector<1x32xf32> to vector<8x32xf32>
    %249 = arith.mulf %246, %248 : vector<8x32xf32>
    %c0_79 = arith.constant 0 : index
    %c0_80 = arith.constant 0 : index
    %250 = vector.load %arg8[%c0_79, %c0_80] : memref<1x32xf32, #tpu.memory_space<vmem>>, vector<1x32xf32>
    %251 = vector.broadcast %250 : vector<1x32xf32> to vector<8x32xf32>
    %252 = arith.addf %249, %251 : vector<8x32xf32>
    %c8 = arith.constant 8 : index
    %c0_81 = arith.constant 0 : index
    %253 = vector.load %arg9[%c8, %c0_81] : memref<16x32xf32, #tpu.memory_space<vmem>>, vector<8x32xf32>
    tpu.vector_store %arg9[%c8, %c0_81], %252 {strides = array<i32>} : memref<16x32xf32, #tpu.memory_space<vmem>>, vector<8x32xf32>,
    return
  }
  func.func @transform_0(%arg0: i32) -> (i32, i32) {
    %c0_i32 = arith.constant 0 : i32
    %c0_i32_0 = arith.constant 0 : i32
    %c0_i32_1 = arith.constant 0 : i32
    return %c0_i32, %c0_i32_0 : i32, i32
  }
  func.func @transform_1(%arg0: i32) -> (i32, i32) {
    %c0_i32 = arith.constant 0 : i32
    %c0_i32_0 = arith.constant 0 : i32
    %c0_i32_1 = arith.constant 0 : i32
    return %c0_i32, %c0_i32_0 : i32, i32
  }
  func.func @transform_2(%arg0: i32) -> (i32, i32) {
    %c0_i32 = arith.constant 0 : i32
    %c0_i32_0 = arith.constant 0 : i32
    %c0_i32_1 = arith.constant 0 : i32
    return %c0_i32, %c0_i32_0 : i32, i32
  }
  func.func @transform_3(%arg0: i32) -> (i32, i32) {
    %c0_i32 = arith.constant 0 : i32
    %c0_i32_0 = arith.constant 0 : i32
    %c0_i32_1 = arith.constant 0 : i32
    return %c0_i32, %c0_i32_0 : i32, i32
  }
  func.func @transform_4(%arg0: i32) -> (i32, i32) {
    %c0_i32 = arith.constant 0 : i32
    %c0_i32_0 = arith.constant 0 : i32
    %c0_i32_1 = arith.constant 0 : i32
    return %c0_i32, %c0_i32_0 : i32, i32
  }
  func.func @transform_5(%arg0: i32) -> (i32, i32) {
    %c0_i32 = arith.constant 0 : i32
    %c0_i32_0 = arith.constant 0 : i32
    %c0_i32_1 = arith.constant 0 : i32
    return %c0_i32, %c0_i32_0 : i32, i32
  }
  func.func @transform_6(%arg0: i32) -> (i32, i32) {
    %c0_i32 = arith.constant 0 : i32
    %c0_i32_0 = arith.constant 0 : i32
    %c0_i32_1 = arith.constant 0 : i32
    return %c0_i32, %c0_i32_0 : i32, i32
  }
  func.func @transform_7(%arg0: i32) -> (i32, i32) {
    %c0_i32 = arith.constant 0 : i32
    %c0_i32_0 = arith.constant 0 : i32
    %c0_i32_1 = arith.constant 0 : i32
    return %c0_i32, %c0_i32_0 : i32, i32
  }
  func.func @transform_8(%arg0: i32) -> (i32, i32) {
    %c0_i32 = arith.constant 0 : i32
    %c0_i32_0 = arith.constant 0 : i32
    %c0_i32_1 = arith.constant 0 : i32
    return %c0_i32, %c0_i32_0 : i32, i32
  }
}

</mosaic_0001>

<bundles_post_ra>
// kernel: tpu_custom_call.1
= control target key start
LH: loop header
LB: loop body
LE: loop exit
PB: predicated region body
PF: predicated region fallthrough
CT: control target
= control target key end

     0   :  { %13 = vsyncpa [#allocation3], 0  ;;  %s2981_s0 = inlined_call_operand.hbm [shape: f32[16,32], index: 0, kind: input, shape index: {}]   ;;  %s2982_s1 = inlined_call_operand.vmem [shape: f32[2,8], index: 1, kind: input, shape index: {}]   ;;  %s2983_s2 = inlined_call_operand.hbm [shape: f32[32,96], index: 2, kind: input, shape index: {}]   ;;  %s2984_s3 = inlined_call_operand.vmem [shape: f32[1,96], index: 3, kind: input, shape index: {}]   ;;  %s2985_s4 = inlined_call_operand.hbm [shape: f32[32,32], index: 4, kind: input, shape index: {}]   ;;  %s2986_s5 = inlined_call_operand.vmem [shape: f32[1,32], index: 5, kind: input, shape index: {}]   ;;  %s2987_s6 = inlined_call_operand.vmem [shape: f32[1,32], index: 6, kind: input, shape index: {}]   ;;  %s2988_s7 = inlined_call_operand.vmem [shape: f32[1,32], index: 7, kind: input, shape index: {}]   ;;  %s2989_s8 = inlined_call_operand.hbm [shape: f32[16,32], index: 8, kind: output, shape index: {}]  }
   0x1   :  { %14 = vsyncpa [#allocation6], 0 }
   0x2   :  { %15 = vsyncpa [#allocation4], 0  ;;  %s2597_s27 = smov [#allocation5]   ;;  %s2598_s29 = smov [#allocation2]  }
   0x3   :  { %s35_s28 = sshll.u32 %s2597_s27, 4  ;;  %s21_s30 = sshll.u32 %s2598_s29, 4  ;;  %s36_s28 = int_to_ptr.vmem [resolvable:$true] %s35_s28  ;;  %s2661_s30 = int_to_ptr.vmem [resolvable:$true] %s21_s30 }
   0x4   :  { %s2503_s11 = scalar_lea.hbm %s2983_s2, 512 }
   0x5   :  { %p2504_p0 = scmp.ne.s32.totalorder %s2983_s2, %s2503_s11  ;;  %p2507_p1 = scmp.lt.u32.totalorder %s2503_s11, %s2983_s2 }
   0x7   :  { %p2509_p2 = pnand %p2507_p1, %p2504_p0 }
   0x9   :  { %2512 = shalt.err (!%p2509_p2)
}
   0xa   :  { %s2513_s16 = scalar_lea.vmem %s36_s28, 512  ;;  %p2518_p4 = scmp.lt.s32.totalorder %s36_s28, %s36_s28 }
   0xb   :  { %p2514_p3 = scmp.ne.s32.totalorder %s36_s28, %s2513_s16  ;;  %p2519_p5 = scmp.lt.s32.totalorder %s2513_s16, %s2513_s16 }
   0xd   :  { %p2520_p6 = por %p2519_p5, %p2518_p4 }
   0xf   :  { %p2521_p7 = pnand %p2520_p6, %p2514_p3 }
  0x11   :  { %2524 = shalt.err (!%p2521_p7)
}
  0x12   :  { %s2599_s17 = smov 128   ;;  %s2600_s18 = smov 8  }
  0x13   :  { %41 = dma.hbm_to_vmem [thread:$0]  %s2983_s2, 512, %s36_s28, [#allocation6], %s2599_s17, %s2599_s17, %s2600_s18  }
  0x14   :  { %s2525_s23 = scalar_lea.hbm %s2981_s0, 256 }
  0x15   :  { %p2526_p8 = scmp.ne.s32.totalorder %s2981_s0, %s2525_s23  ;;  %p2529_p9 = scmp.lt.u32.totalorder %s2525_s23, %s2981_s0 }
  0x17   :  { %p2531_p10 = pnand %p2529_p9, %p2526_p8 }
  0x19   :  { %2534 = shalt.err (!%p2531_p10)
}
  0x1a   :  { %s2535_s29 = scalar_lea.vmem %s2661_s30, 256  ;;  %p2540_p12 = scmp.lt.s32.totalorder %s2661_s30, %s2661_s30 }
  0x1b   :  { %p2536_p11 = scmp.ne.s32.totalorder %s2661_s30, %s2535_s29  ;;  %p2541_p13 = scmp.lt.s32.totalorder %s2535_s29, %s2535_s29 }
  0x1d   :  { %p2542_p0 = por %p2541_p13, %p2540_p12 }
  0x1f   :  { %p2543_p1 = pnand %p2542_p0, %p2536_p11 }
  0x21   :  { %2546 = shalt.err (!%p2543_p1)
}
  0x22   :  { %27 = dma.hbm_to_vmem [thread:$0]  %s2981_s0, 256, %s2661_s30, [#allocation3], %s2599_s17, %s2599_s17, %s2600_s18  }
  0x23   :  { %s2601_s9 = smov [#allocation7]   ;;  %s2547_s13 = scalar_lea.hbm %s2985_s4, 512 }
  0x24   :  { %s49_s10 = sshll.u32 %s2601_s9, 4  ;;  %p2548_p2 = scmp.ne.s32.totalorder %s2985_s4, %s2547_s13  ;;  %s50_s10 = int_to_ptr.vmem [resolvable:$true] %s49_s10 }
  0x25   :  { %p2551_p3 = scmp.lt.u32.totalorder %s2547_s13, %s2985_s4 }
  0x27   :  { %p2553_p4 = pnand %p2551_p3, %p2548_p2 }
  0x29   :  { %2556 = shalt.err (!%p2553_p4)
}
  0x2a   :  { %s2557_s20 = scalar_lea.vmem %s50_s10, 512  ;;  %p2562_p6 = scmp.lt.s32.totalorder %s50_s10, %s50_s10 }
  0x2b   :  { %p2558_p5 = scmp.ne.s32.totalorder %s50_s10, %s2557_s20  ;;  %p2563_p7 = scmp.lt.s32.totalorder %s2557_s20, %s2557_s20 }
  0x2d   :  { %p2564_p8 = por %p2563_p7, %p2562_p6 }
  0x2f   :  { %p2565_p9 = pnand %p2564_p8, %p2558_p5 }
  0x31   :  { %2568 = shalt.err (!%p2565_p9)
}
  0x32   :  { %55 = dma.hbm_to_vmem [thread:$0]  %s2985_s4, 512, %s50_s10, [#allocation6], %s2599_s17, %s2599_s17, %s2600_s18  }
  0x33   :  { %2591 = dma.done.wait [#allocation3], 256  }
  0x34   :  { %2592 = vsyncadd [#allocation3], 4294967040 }
  0x35   :  { %2593 = dma.done.wait [#allocation6], 1024  }
  0x36   :  { %2594 = vsyncadd [#allocation6], 4294966272  ;;  %vm85_vm0 = vcmask 261120   ;;  %v74_v0 = vld [vmem:[#allocation5] sm:$0xff]  ;;  %v75_v1 = vld [vmem:[#allocation5 + $0x8] sm:$0xff]  ;;  %v2602_v8 = vmov 0.0   ;;  %v171_v15 = vlaneseq }
  0x37   :  { %v76_v2 = vld [vmem:[#allocation5 + $0x10] sm:$0xff]  ;;  %v2427_v3 = vpack.c.bf16 %v75_v1, %v74_v0  ;;  %v77_v4 = vld [vmem:[#allocation5 + $0x18] sm:$0xff]  ;;  %2307 = vmatprep.subr.mxu1 %v2602_v8  ;;  %vm2603_vm1 = vmmov 0   ;;  %s2604_s22 = smov 96   ;;  %vm186_vm2 = vcmask 64512   ;;  %s2606_s24 = smov 88  }
  0x38   :  { %v2713_v5 = vld [vmem:[#allocation2] sm:$0xff]  ;;  %v2431_v6 = vpack.c.bf16 %v77_v4, %v76_v2  ;;  %v2717_v7 = vld [vmem:[#allocation2 + $0x8] sm:$0xff]  ;;  %2309 = vmatprep.mubr.msk.f32.mxu1 %vm2603_vm1, %v2602_v8  ;;  %v2742_v16 = vshrl.u32 %v171_v15, 7  ;;  %s2607_s25 = smov 120   ;;  %s2608_s26 = smov 80   ;;  %v2767_v34 = vld [vmem:[#allocation7] sm:$0xff] }
  0x39   :  { %2304 = vmatprep.mubr.msk.f32.mxu0 %vm85_vm0, %v2713_v5  ;;  %2428 = vmatprep.subr.bf16.mxu0 %v2427_v3  ;;  %v2201_v9 = vld [vmem:[%s2984_s3] ss:$0 sm:$0xff]  ;;  %s2609_s27 = smov 112   ;;  %s2611_s28 = smov 72  }
  0x3a   :  { %2430 = vmatpush3.bf16.msra.mxu0 %v2427_v3  ;;  %v173_v17 = vsub.s32 0, %v2742_v16  ;;  %v2748_v18 = vld [vmem:[%s2982_s1] sm:$0x3]  ;;  %s2605_s1 = smov 64   ;;  %s2612_s9 = smov 104   ;;  %v1180_v4 = vsub.s32 1, %v2742_v16 }
  0x3b   :  { %2432 = vmatprep.subr.bf16.mxu0 %v2431_v6  ;;  %v2790_v41 = vld [vmem:[%s2986_s5] ss:$0 sm:$0xff]  ;;  %s2610_s5 = smov 48   ;;  %s2613_s10 = smov 56  }
  0x3c   :  { %v2751_v19 = vrot.slane %v2748_v18, %v173_v17  ;;  %v182_v42 = vadd.f32 %v2790_v41, %v2713_v5  ;;  %s2614_s11 = smov 40  }
  0x3e   :  { %2434 = vmatpush3.bf16.msra.mxu0 %v2431_v6 }
  0x3f   :  { %2327 = vmatprep.subr.mxu0 %v2602_v8 }
  0x41   :  { %2305 = vmatmul.mubr.msk.f32.vlgmr.msra.gmra.mrb[0].mxu0 %vm85_vm0, %v2717_v7 }
  0x42   :  { %2329 = vmatprep.mubr.msk.f32.mxu0 %vm2603_vm1, %v2602_v8 }
 0x114   :  { %v2306_v10 = vpop.f32.mrb[0].mxu0 }
 0x115   :  { %v2730_v11 = vadd.f32 %v2306_v10, %v2201_v9  ;;  %v158_v12 = vpop.f32.mrb[1].mxu0 }
 0x116   :  { %v2732_v13 = vadd.f32 %v2201_v9, %v158_v12  ;;  %v2835_v9 = vrot.slane %v2748_v18, %v1180_v4 }
 0x118   :  { %184 = vrot.lane.b32.xlu0 %v2732_v13, %s2604_s22 }
 0x18a   :  { %v185_v14 = vpop.permute.xlu0 %184 }
 0x18b   :  { %2308 = vmatpush3.xpose.msk.msra.mxu1 %vm186_vm2, %v185_v14 }
 0x18c   :  { %2312 = vmatprep.subr.mxu1 %v2602_v8 }
 0x18e   :  { %2310 = vmatmul.mubr.msk.f32.vlgmr.msra.gmra.mrb[0].mxu1 %vm186_vm2, %v2732_v13 }
 0x18f   :  { %2314 = vmatprep.mubr.msk.f32.mxu1 %vm2603_vm1, %v2602_v8 }
 0x261   :  { %v257_v20 = vpop.f32.mrb[0].mxu1 }
 0x262   :  { %v261_v21 = vmul.f32 0.35355338, %v257_v20  ;;  %v2311_v22 = vpop.f32.mrb[1].mxu1 }
 0x264   :  { %v262_v23 = vadd.f32 %v261_v21, %v2751_v19 }
 0x266   :  { %v263_v24 = vsel %vm186_vm2, %v262_v23, -inf }
 0x267   :  { %264 = vmax.xlane.f32.xlu0 %v263_v24 }
 0x2f4   :  { %v265_v25 = vpop.xlane.xlu0 %264 }
 0x2f5   :  { %v266_v26 = vsub.f32 %v262_v23, %v265_v25 }
 0x2f7   :  { %v267_v27 = vmul.f32 1.442695, %v266_v26 }
 0x2f9   :  { %2467 = vpow2.f32 %v267_v27 }
 0x303   :  { %v2468_v28 = vpop.eup %2467 }
 0x304   :  { %v269_v29 = vsel %vm186_vm2, %v2468_v28, 0.0 }
 0x305   :  { %270 = vadd.xlane.f32.xlu1 %v269_v29 }
 0x316   :  { %274 = vrot.lane.b32.xlu1 %v2732_v13, %s2605_s1 }
 0x31a   :  { %426 = vrot.lane.b32.xlu1 %v2732_v13, %s2606_s24 }
 0x31e   :  { %424 = vrot.lane.b32.xlu1 %v2732_v13, %s2607_s25 }
 0x322   :  { %667 = vrot.lane.b32.xlu1 %v2732_v13, %s2608_s26 }
 0x326   :  { %665 = vrot.lane.b32.xlu1 %v2732_v13, %s2609_s27 }
 0x392   :  { %v271_v30 = vpop.xlane.xlu1 %270 }
 0x393   :  { %2469 = vrcp.f32 %v271_v30 }
 0x396   :  { %v275_v31 = vpop.permute.xlu1 %274 }
 0x397   :  { %2313 = vmatpush3.msra.mxu1 %v275_v31 }
 0x398   :  { %2317 = vmatprep.subr.mxu1 %v2602_v8 }
 0x39a   :  { %v427_v35 = vpop.permute.xlu1 %426 }
 0x39d   :  { %v2470_v32 = vpop.eup %2469 }
 0x39e   :  { %v273_v33 = vmul.f32 %v2470_v32, %v2468_v28  ;;  %v425_v36 = vpop.permute.xlu1 %424 }
 0x3a0   :  { %2315 = vmatmul.mubr.msk.f32.vlgmr.msra.gmra.mrb[2].mxu1 %vm186_vm2, %v273_v33 }
 0x3a1   :  { %2318 = vmatpush3.msra.mxu1 %v2767_v34  ;;  %2319 = vmatprep.mubr.msk.f32.mxu1 %vm2603_vm1, %v2602_v8 }
 0x3a2   :  { %2322 = vmatprep.subr.mxu1 %v2602_v8  ;;  %v668_v39 = vpop.permute.xlu1 %667 }
 0x3a6   :  { %v666_v40 = vpop.permute.xlu1 %665 }
 0x473   :  { %v346_v37 = vpop.f32.mrb[2].mxu1 }
 0x474   :  { %v2316_v38 = vpop.f32.mrb[3].mxu1  ;;  %2320 = vmatmul.mubr.msk.f32.vlgmr.msra.gmra.mrb[4].mxu1 %vm186_vm2, %v346_v37 }
 0x475   :  { %2323 = vmatpush3.xpose.msk.msra.mxu1 %vm186_vm2, %v427_v35  ;;  %2324 = vmatprep.mubr.msk.f32.mxu1 %vm2603_vm1, %v2602_v8 }
 0x476   :  { %2337 = vmatprep.subr.mxu1 %v2602_v8 }
 0x478   :  { %2325 = vmatmul.mubr.msk.f32.vlgmr.msra.gmra.mrb[6].mxu1 %vm186_vm2, %v425_v36 }
 0x479   :  { %2338 = vmatpush3.xpose.msk.msra.mxu1 %vm186_vm2, %v668_v39  ;;  %2339 = vmatprep.mubr.msk.f32.mxu1 %vm2603_vm1, %v2602_v8 }
 0x47a   :  { %2342 = vmatprep.subr.mxu1 %v2602_v8 }
 0x47c   :  { %2340 = vmatmul.mubr.msk.f32.vlgmr.msra.gmra.mrb[8].mxu1 %vm186_vm2, %v666_v40 }
 0x47d   :  { %2344 = vmatprep.mubr.msk.f32.mxu1 %vm2603_vm1, %v2602_v8 }
 0x547   :  { %v419_v43 = vpop.f32.mrb[4].mxu1 }
 0x548   :  { %v2794_v44 = vadd.f32 %v419_v43, %v182_v42  ;;  %v2321_v45 = vpop.f32.mrb[5].mxu1 }
 0x54b   :  { %v2796_v46 = vpop.f32.mrb[6].mxu1 }
 0x54c   :  { %v2326_v47 = vpop.f32.mrb[7].mxu1  ;;  %v502_v18 = vmul.f32 0.35355338, %v2796_v46 }
 0x54e   :  { %v503_v24 = vadd.f32 %v502_v18, %v2751_v19 }
 0x54f   :  { %v739_v48 = vpop.f32.mrb[8].mxu1 }
 0x550   :  { %v743_v49 = vmul.f32 0.35355338, %v739_v48  ;;  %v2341_v50 = vpop.f32.mrb[9].mxu1  ;;  %v504_v25 = vsel %vm186_vm2, %v503_v24, -inf }
 0x552   :  { %v744_v51 = vadd.f32 %v743_v49, %v2751_v19 }
 0x554   :  { %v745_v52 = vsel %vm186_vm2, %v744_v51, -inf }
 0x555   :  { %746 = vmax.xlane.f32.xlu0 %v745_v52 }
 0x56b   :  { %756 = vrot.lane.b32.xlu0 %v2732_v13, %s2610_s5 }
 0x56f   :  { %908 = vrot.lane.b32.xlu0 %v2732_v13, %s2611_s28 }
 0x573   :  { %906 = vrot.lane.b32.xlu0 %v2732_v13, %s2612_s9 }
 0x577   :  { %1191 = vrot.lane.b32.xlu0 %v2730_v11, %s2604_s22 }
 0x5e2   :  { %v747_v53 = vpop.xlane.xlu0 %746 }
 0x5e3   :  { %v748_v54 = vsub.f32 %v744_v51, %v747_v53 }
 0x5e5   :  { %v749_v55 = vmul.f32 1.442695, %v748_v54 }
 0x5e6   :  { %v757_v56 = vpop.permute.xlu0 %756 }
 0x5e7   :  { %2471 = vpow2.f32 %v749_v55  ;;  %2343 = vmatpush3.msra.mxu1 %v757_v56 }
 0x5e8   :  { %2352 = vmatprep.subr.mxu1 %v2602_v8 }
 0x5ea   :  { %v909_v60 = vpop.permute.xlu0 %908 }
 0x5ee   :  { %v907_v62 = vpop.permute.xlu0 %906 }
 0x5f1   :  { %v2472_v57 = vpop.eup %2471 }
 0x5f2   :  { %v751_v58 = vsel %vm186_vm2, %v2472_v57, 0.0  ;;  %v1192_v0 = vpop.permute.xlu0 %1191 }
 0x5f3   :  { %752 = vadd.xlane.f32.xlu1 %v751_v58 }
 0x604   :  { %1280 = vrot.lane.b32.xlu1 %v2730_v11, %s2605_s1 }
 0x608   :  { %1432 = vrot.lane.b32.xlu1 %v2730_v11, %s2606_s24 }
 0x60c   :  { %1430 = vrot.lane.b32.xlu1 %v2730_v11, %s2607_s25 }
 0x680   :  { %v753_v59 = vpop.xlane.xlu1 %752 }
 0x681   :  { %2473 = vrcp.f32 %v753_v59 }
 0x684   :  { %v1281_v1 = vpop.permute.xlu1 %1280 }
 0x688   :  { %v1433_v26 = vpop.permute.xlu1 %1432 }
 0x68b   :  { %v2474_v61 = vpop.eup %2473 }
 0x68c   :  { %v755_v63 = vmul.f32 %v2474_v61, %v2472_v57  ;;  %v1431_v27 = vpop.permute.xlu1 %1430  ;;  %v2882_v61 = vld [vmem:[#allocation7 + $0x8] sm:$0xff] }
 0x68e   :  { %2345 = vmatmul.mubr.msk.f32.vlgmr.msra.gmra.mrb[10].mxu1 %vm186_vm2, %v755_v63 }
 0x68f   :  { %2353 = vmatpush3.xpose.msk.msra.mxu1 %vm186_vm2, %v909_v60  ;;  %2354 = vmatprep.mubr.msk.f32.mxu1 %vm2603_vm1, %v2602_v8 }
 0x690   :  { %2367 = vmatprep.subr.mxu1 %v2602_v8 }
 0x692   :  { %2355 = vmatmul.mubr.msk.f32.vlgmr.msra.gmra.mrb[12].mxu1 %vm186_vm2, %v907_v62 }
 0x693   :  { %2368 = vmatpush3.xpose.msk.msra.mxu1 %vm186_vm2, %v1192_v0  ;;  %2369 = vmatprep.mubr.msk.f32.mxu1 %vm2603_vm1, %v2602_v8 }
 0x694   :  { %2372 = vmatprep.subr.mxu1 %v2602_v8 }
 0x696   :  { %2370 = vmatmul.mubr.msk.f32.vlgmr.msra.gmra.mrb[14].mxu1 %vm186_vm2, %v2730_v11 }
 0x697   :  { %2373 = vmatpush3.msra.mxu1 %v1281_v1  ;;  %2374 = vmatprep.mubr.msk.f32.mxu1 %vm2603_vm1, %v2602_v8 }
 0x698   :  { %2382 = vmatprep.subr.mxu1 %v2602_v8 }
 0x761   :  { %v2831_v2 = vpop.f32.mrb[10].mxu1 }
 0x762   :  { %v2346_v3 = vpop.f32.mrb[11].mxu1 }
 0x765   :  { %v980_v5 = vpop.f32.mrb[12].mxu1 }
 0x766   :  { %v2356_v6 = vpop.f32.mrb[13].mxu1  ;;  %v984_v38 = vmul.f32 0.35355338, %v980_v5 }
 0x768   :  { %v985_v42 = vadd.f32 %v984_v38, %v2751_v19 }
 0x769   :  { %v1263_v10 = vpop.f32.mrb[14].mxu1 }
 0x76a   :  { %v1267_v12 = vmul.f32 0.35355338, %v1263_v10  ;;  %v2371_v14 = vpop.f32.mrb[15].mxu1  ;;  %v986_v43 = vsel %vm186_vm2, %v985_v42, -inf }
 0x76c   :  { %v1268_v15 = vadd.f32 %v1267_v12, %v2835_v9  ;;  %v2892_v12 = vld [vmem:[#allocation7 + $0x10] sm:$0xff] }
 0x76e   :  { %v1269_v17 = vsel %vm186_vm2, %v1268_v15, -inf }
 0x76f   :  { %1270 = vmax.xlane.f32.xlu0 %v1269_v17 }
 0x785   :  { %1671 = vrot.lane.b32.xlu0 %v2730_v11, %s2609_s27 }
 0x7fc   :  { %v1271_v20 = vpop.xlane.xlu0 %1270 }
 0x7fd   :  { %v1272_v21 = vsub.f32 %v1268_v15, %v1271_v20 }
 0x7ff   :  { %v1273_v22 = vmul.f32 1.442695, %v1272_v21 }
 0x800   :  { %v1672_v32 = vpop.permute.xlu0 %1671 }
 0x801   :  { %2475 = vpow2.f32 %v1273_v22  ;;  %v2907_v22 = vld [vmem:[#allocation7 + $0x18] sm:$0xff] }
 0x80b   :  { %v2476_v16 = vpop.eup %2475 }
 0x80c   :  { %v1275_v23 = vsel %vm186_vm2, %v2476_v16, 0.0 }
 0x80d   :  { %1276 = vadd.xlane.f32.xlu1 %v1275_v23 }
 0x81e   :  { %1673 = vrot.lane.b32.xlu1 %v2730_v11, %s2608_s26 }
 0x842   :  { %505 = vmax.xlane.f32.xlu1 %v504_v25 }
 0x853   :  { %515 = vrot.lane.b32.xlu1 %v2732_v13, %s2613_s10 }
 0x89a   :  { %v1277_v28 = vpop.xlane.xlu1 %1276 }
 0x89b   :  { %2477 = vrcp.f32 %v1277_v28 }
 0x89e   :  { %v1674_v31 = vpop.permute.xlu1 %1673 }
 0x8a5   :  { %v2478_v29 = vpop.eup %2477 }
 0x8a6   :  { %v1279_v30 = vmul.f32 %v2478_v29, %v2476_v16 }
 0x8a8   :  { %2375 = vmatmul.mubr.msk.f32.vlgmr.msra.gmra.mrb[16].mxu1 %vm186_vm2, %v1279_v30 }
 0x8a9   :  { %2383 = vmatpush3.xpose.msk.msra.mxu1 %vm186_vm2, %v1433_v26  ;;  %2384 = vmatprep.mubr.msk.f32.mxu1 %vm2603_vm1, %v2602_v8 }
 0x8aa   :  { %2397 = vmatprep.subr.mxu1 %v2602_v8 }
 0x8ac   :  { %2385 = vmatmul.mubr.msk.f32.vlgmr.msra.gmra.mrb[18].mxu1 %vm186_vm2, %v1431_v27 }
 0x8ad   :  { %2398 = vmatpush3.xpose.msk.msra.mxu1 %vm186_vm2, %v1674_v31  ;;  %2399 = vmatprep.mubr.msk.f32.mxu1 %vm2603_vm1, %v2602_v8 }
 0x8ae   :  { %2402 = vmatprep.subr.mxu1 %v2602_v8 }
 0x8b0   :  { %2400 = vmatmul.mubr.msk.f32.vlgmr.msra.gmra.mrb[20].mxu1 %vm186_vm2, %v1672_v32 }
 0x8b1   :  { %2404 = vmatprep.mubr.msk.f32.mxu1 %vm2603_vm1, %v2602_v8 }
 0x8cf   :  { %v506_v33 = vpop.xlane.xlu1 %505 }
 0x8d0   :  { %v507_v35 = vsub.f32 %v503_v24, %v506_v33 }
 0x8d2   :  { %v508_v36 = vmul.f32 1.442695, %v507_v35 }
 0x8d3   :  { %v516_v37 = vpop.permute.xlu1 %515 }
 0x8d4   :  { %2479 = vpow2.f32 %v508_v36  ;;  %2328 = vmatpush3.msra.mxu0 %v516_v37 }
 0x8d5   :  { %2332 = vmatprep.subr.mxu0 %v2602_v8 }
 0x8de   :  { %v2480_v39 = vpop.eup %2479 }
 0x8df   :  { %v510_v40 = vsel %vm186_vm2, %v2480_v39, 0.0 }
 0x8e0   :  { %511 = vadd.xlane.f32.xlu0 %v510_v40 }
 0x8e4   :  { %987 = vmax.xlane.f32.xlu0 %v986_v43 }
 0x96d   :  { %v512_v45 = vpop.xlane.xlu0 %511 }
 0x96e   :  { %2481 = vrcp.f32 %v512_v45 }
 0x971   :  { %v988_v46 = vpop.xlane.xlu0 %987 }
 0x972   :  { %v989_v47 = vsub.f32 %v985_v42, %v988_v46 }
 0x974   :  { %v990_v48 = vmul.f32 1.442695, %v989_v47 }
 0x976   :  { %2483 = vpow2.f32 %v990_v48 }
 0x978   :  { %v2482_v49 = vpop.eup %2481 }
 0x979   :  { %v514_v50 = vmul.f32 %v2482_v49, %v2480_v39 }
 0x97b   :  { %2330 = vmatmul.mubr.msk.f32.vlgmr.msra.gmra.mrb[2].mxu0 %vm186_vm2, %v514_v50  ;;  %v2867_v51 = vpop.f32.mrb[16].mxu1 }
 0x97c   :  { %v2376_v52 = vpop.f32.mrb[17].mxu1  ;;  %2334 = vmatprep.mubr.msk.f32.mxu0 %vm2603_vm1, %v2602_v8  ;;  %2333 = vmatpush3.msra.mxu0 %v2882_v61 }
 0x97d   :  { %2347 = vmatprep.subr.mxu0 %v2602_v8 }
 0x97f   :  { %v1504_v19 = vpop.f32.mrb[18].mxu1 }
 0x980   :  { %v2484_v53 = vpop.eup %2483  ;;  %v2386_v54 = vpop.f32.mrb[19].mxu1 }
 0x981   :  { %v992_v55 = vsel %vm186_vm2, %v2484_v53, 0.0 }
 0x982   :  { %993 = vadd.xlane.f32.xlu0 %v992_v55 }
 0x983   :  { %v1745_v56 = vpop.f32.mrb[20].mxu1 }
 0x984   :  { %v1749_v57 = vmul.f32 0.35355338, %v1745_v56  ;;  %v2401_v58 = vpop.f32.mrb[21].mxu1 }
 0x986   :  { %v1750_v59 = vadd.f32 %v1749_v57, %v2835_v9 }
 0x988   :  { %v1751_v60 = vsel %vm186_vm2, %v1750_v59, -inf }
 0x989   :  { %1752 = vmax.xlane.f32.xlu1 %v1751_v60 }
 0x998   :  { %997 = vrot.lane.b32.xlu0 %v2732_v13, %s2614_s11  ;;  %v1508_v13 = vmul.f32 0.35355338, %v1504_v19 }
 0x99a   :  { %1762 = vrot.lane.b32.xlu1 %v2730_v11, %s2610_s5  ;;  %v1509_v5 = vadd.f32 %v1508_v13, %v2835_v9 }
 0x99c   :  { %v1510_v6 = vsel %vm186_vm2, %v1509_v5, -inf }
 0x99e   :  { %1914 = vrot.lane.b32.xlu1 %v2730_v11, %s2611_s28 }
 0x9a2   :  { %1912 = vrot.lane.b32.xlu1 %v2730_v11, %s2612_s9 }
 0xa0f   :  { %v994_v10 = vpop.xlane.xlu0 %993 }
 0xa13   :  { %v998_v20 = vpop.permute.xlu0 %997 }
 0xa16   :  { %v1753_v62 = vpop.xlane.xlu1 %1752 }
 0xa17   :  { %v1754_v63 = vsub.f32 %v1750_v59, %v1753_v62 }
 0xa19   :  { %v1755_v0 = vmul.f32 1.442695, %v1754_v63 }
 0xa1a   :  { %v1763_v1 = vpop.permute.xlu1 %1762 }
 0xa1b   :  { %2485 = vpow2.f32 %v1755_v0  ;;  %2403 = vmatpush3.msra.mxu1 %v1763_v1  ;;  %v2221_v1 = vld [vmem:[%s2987_s6] ss:$0 sm:$0xff]  ;;  %s2615_s6 = smov [#allocation8]  }
 0xa1c   :  { %2412 = vmatprep.subr.mxu1 %v2602_v8  ;;  %2487 = vrcp.f32 %v994_v10  ;;  %v1189_v10 = vadd.f32 %v2790_v41, %v2717_v7 }
 0xa1e   :  { %v1915_v25 = vpop.permute.xlu1 %1914 }
 0xa22   :  { %v1913_v27 = vpop.permute.xlu1 %1912 }
 0xa25   :  { %v2486_v3 = vpop.eup %2485 }
 0xa26   :  { %v1757_v4 = vsel %vm186_vm2, %v2486_v3, 0.0  ;;  %v2488_v17 = vpop.eup %2487 }
 0xa27   :  { %1758 = vadd.xlane.f32.xlu0 %v1757_v4  ;;  %v996_v21 = vmul.f32 %v2488_v17, %v2484_v53 }
 0xa2b   :  { %1511 = vmax.xlane.f32.xlu0 %v1510_v6 }
 0xa41   :  { %1521 = vrot.lane.b32.xlu0 %v2730_v11, %s2613_s10 }
 0xa4e   :  { %v587_v14 = vpop.f32.mrb[2].mxu0 }
 0xa4f   :  { %v2331_v15 = vpop.f32.mrb[3].mxu0  ;;  %2335 = vmatmul.mubr.msk.f32.vlgmr.msra.gmra.mrb[4].mxu0 %vm186_vm2, %v587_v14 }
 0xa50   :  { %2348 = vmatpush3.msra.mxu0 %v2892_v12  ;;  %2349 = vmatprep.mubr.msk.f32.mxu0 %vm2603_vm1, %v2602_v8 }
 0xa51   :  { %2357 = vmatprep.subr.mxu0 %v2602_v8 }
 0xa57   :  { %2350 = vmatmul.mubr.msk.f32.vlgmr.msra.gmra.mrb[4].mxu0 %vm186_vm2, %v2831_v2 }
 0xa58   :  { %2358 = vmatpush3.msra.mxu0 %v998_v20  ;;  %2359 = vmatprep.mubr.msk.f32.mxu0 %vm2603_vm1, %v2602_v8 }
 0xa59   :  { %2362 = vmatprep.subr.mxu0 %v2602_v8 }
 0xa5b   :  { %2360 = vmatmul.mubr.msk.f32.vlgmr.msra.gmra.mrb[6].mxu0 %vm186_vm2, %v996_v21 }
 0xa5c   :  { %2364 = vmatprep.mubr.msk.f32.mxu0 %vm2603_vm1, %v2602_v8  ;;  %2363 = vmatpush3.msra.mxu0 %v2907_v22 }
 0xa5d   :  { %2377 = vmatprep.subr.mxu0 %v2602_v8 }
 0xab4   :  { %v1759_v16 = vpop.xlane.xlu0 %1758 }
 0xab5   :  { %2489 = vrcp.f32 %v1759_v16 }
 0xab8   :  { %v1512_v2 = vpop.xlane.xlu0 %1511 }
 0xab9   :  { %v1513_v23 = vsub.f32 %v1509_v5, %v1512_v2 }
 0xabb   :  { %v1514_v18 = vmul.f32 1.442695, %v1513_v23 }
 0xabc   :  { %v1522_v32 = vpop.permute.xlu0 %1521 }
 0xabd   :  { %2491 = vpow2.f32 %v1514_v18 }
 0xabf   :  { %v2490_v24 = vpop.eup %2489 }
 0xac0   :  { %v1761_v26 = vmul.f32 %v2490_v24, %v2486_v3  ;;  %v2222_v3 = vld [vmem:[%s2988_s7] ss:$0 sm:$0xff]  ;;  %s2188_s7 = sshll.u32 %s2615_s6, 4  ;;  %s2189_s7 = int_to_ptr.vmem [resolvable:$true] %s2188_s7 }
 0xac1   :  { %s2569_s16 = scalar_lea.vmem %s2189_s7, 256  ;;  %p2574_p11 = scmp.lt.s32.totalorder %s2189_s7, %s2189_s7 }
 0xac2   :  { %2405 = vmatmul.mubr.msk.f32.vlgmr.msra.gmra.mrb[22].mxu1 %vm186_vm2, %v1761_v26  ;;  %p2570_p10 = scmp.ne.s32.totalorder %s2189_s7, %s2569_s16  ;;  %p2575_p12 = scmp.lt.s32.totalorder %s2569_s16, %s2569_s16 }
 0xac3   :  { %2413 = vmatpush3.xpose.msk.msra.mxu1 %vm186_vm2, %v1915_v25  ;;  %2414 = vmatprep.mubr.msk.f32.mxu1 %vm2603_vm1, %v2602_v8 }
 0xac4   :  { %p2576_p13 = por %p2575_p12, %p2574_p11 }
 0xac6   :  { %2415 = vmatmul.mubr.msk.f32.vlgmr.msra.gmra.mrb[24].mxu1 %vm186_vm2, %v1913_v27  ;;  %p2577_p0 = pnand %p2576_p13, %p2570_p10 }
 0xac7   :  { %v2492_v28 = vpop.eup %2491 }
 0xac8   :  { %v1516_v29 = vsel %vm186_vm2, %v2492_v28, 0.0 }
 0xac9   :  { %1517 = vadd.xlane.f32.xlu1 %v1516_v29 }
 0xb2e   :  { %v1069_v30 = vpop.f32.mrb[6].mxu0 }
 0xb2f   :  { %v2361_v31 = vpop.f32.mrb[7].mxu0  ;;  %2365 = vmatmul.mubr.msk.f32.vlgmr.msra.gmra.mrb[4].mxu0 %vm186_vm2, %v1069_v30 }
 0xb30   :  { %2378 = vmatpush3.msra.mxu0 %v2767_v34  ;;  %2379 = vmatprep.mubr.msk.f32.mxu0 %vm2603_vm1, %v2602_v8 }
 0xb31   :  { %2387 = vmatprep.subr.mxu0 %v2602_v8 }
 0xb33   :  { %2380 = vmatmul.mubr.msk.f32.vlgmr.msra.gmra.mrb[8].mxu0 %vm186_vm2, %v2867_v51 }
 0xb34   :  { %2388 = vmatpush3.msra.mxu0 %v1522_v32  ;;  %2389 = vmatprep.mubr.msk.f32.mxu0 %vm2603_vm1, %v2602_v8 }
 0xb35   :  { %2392 = vmatprep.subr.mxu0 %v2602_v8 }
 0xb56   :  { %v1518_v33 = vpop.xlane.xlu1 %1517 }
 0xb57   :  { %2493 = vrcp.f32 %v1518_v33 }
 0xb61   :  { %v2494_v35 = vpop.eup %2493 }
 0xb62   :  { %v1520_v36 = vmul.f32 %v2494_v35, %v2492_v28 }
 0xb64   :  { %2390 = vmatmul.mubr.msk.f32.vlgmr.msra.gmra.mrb[10].mxu0 %vm186_vm2, %v1520_v36 }
 0xb65   :  { %2393 = vmatpush3.msra.mxu0 %v2882_v61  ;;  %2394 = vmatprep.mubr.msk.f32.mxu0 %vm2603_vm1, %v2602_v8 }
 0xb66   :  { %2407 = vmatprep.subr.mxu0 %v2602_v8 }
 0xb95   :  { %v1834_v34 = vpop.f32.mrb[22].mxu1 }
 0xb96   :  { %v2406_v37 = vpop.f32.mrb[23].mxu1 }
 0xb99   :  { %v1986_v38 = vpop.f32.mrb[24].mxu1 }
 0xb9a   :  { %v1990_v39 = vmul.f32 0.35355338, %v1986_v38  ;;  %v2416_v40 = vpop.f32.mrb[25].mxu1 }
 0xb9c   :  { %v1991_v42 = vadd.f32 %v1990_v39, %v2835_v9 }
 0xb9e   :  { %v1992_v43 = vsel %vm186_vm2, %v1991_v42, -inf }
 0xb9f   :  { %1993 = vmax.xlane.f32.xlu0 %v1992_v43 }
 0xc02   :  { %v1142_v45 = vpop.f32.mrb[4].mxu0 }
 0xc03   :  { %v2436_v46 = vadd.f32 %v1142_v45, %v2794_v44  ;;  %v2366_v47 = vpop.f32.mrb[5].mxu0 }
 0xc05   :  { %v1147_v48 = vsel %vm85_vm0, %v2436_v46, 0.0 }
 0xc06   :  { %1148 = vadd.xlane.f32.xlu0 %v1147_v48 }
 0xc2c   :  { %v1994_v49 = vpop.xlane.xlu0 %1993 }
 0xc2d   :  { %v1995_v50 = vsub.f32 %v1991_v42, %v1994_v49 }
 0xc2f   :  { %v1996_v51 = vmul.f32 1.442695, %v1995_v50 }
 0xc31   :  { %2495 = vpow2.f32 %v1996_v51 }
 0xc37   :  { %v1593_v52 = vpop.f32.mrb[10].mxu0 }
 0xc38   :  { %v2391_v19 = vpop.f32.mrb[11].mxu0  ;;  %2395 = vmatmul.mubr.msk.f32.vlgmr.msra.gmra.mrb[8].mxu0 %vm186_vm2, %v1593_v52 }
 0xc39   :  { %2408 = vmatpush3.msra.mxu0 %v2892_v12  ;;  %2409 = vmatprep.mubr.msk.f32.mxu0 %vm2603_vm1, %v2602_v8 }
 0xc3a   :  { %2417 = vmatprep.subr.mxu0 %v2602_v8 }
 0xc3b   :  { %v2496_v44 = vpop.eup %2495 }
 0xc3c   :  { %v1998_v9 = vsel %vm186_vm2, %v2496_v44, 0.0 }
 0xc3d   :  { %1999 = vadd.xlane.f32.xlu1 %v1998_v9 }
 0xc40   :  { %2410 = vmatmul.mubr.msk.f32.vlgmr.msra.gmra.mrb[8].mxu0 %vm186_vm2, %v1834_v34 }
 0xc41   :  { %2419 = vmatprep.mubr.msk.f32.mxu0 %vm2603_vm1, %v2602_v8 }
 0xc4e   :  { %2003 = vrot.lane.b32.xlu1 %v2730_v11, %s2614_s11 }
 0xc93   :  { %v1149_v53 = vpop.xlane.xlu0 %1148 }
 0xc94   :  { %v1151_v54 = vmul.f32 0.03125, %v1149_v53 }
 0xc96   :  { %v1152_v55 = vsub.f32 %v2436_v46, %v1151_v54 }
 0xc98   :  { %v1153_v56 = vmul.f32 %v1152_v55, %v1152_v55 }
 0xc9a   :  { %v1154_v57 = vsel %vm85_vm0, %v1153_v56, 0.0 }
 0xc9b   :  { %1155 = vadd.xlane.f32.xlu0 %v1154_v57 }
 0xcca   :  { %v2000_v58 = vpop.xlane.xlu1 %1999 }
 0xccb   :  { %2497 = vrcp.f32 %v2000_v58 }
 0xcce   :  { %v2004_v59 = vpop.permute.xlu1 %2003 }
 0xccf   :  { %2418 = vmatpush3.msra.mxu0 %v2004_v59 }
 0xcd0   :  { %2422 = vmatprep.subr.mxu0 %v2602_v8 }
 0xcd5   :  { %v2498_v60 = vpop.eup %2497 }
 0xcd6   :  { %v2002_v61 = vmul.f32 %v2498_v60, %v2496_v44 }
 0xcd8   :  { %2420 = vmatmul.mubr.msk.f32.vlgmr.msra.gmra.mrb[12].mxu0 %vm186_vm2, %v2002_v61 }
 0xcd9   :  { %2423 = vmatpush3.msra.mxu0 %v2907_v22  ;;  %2424 = vmatprep.mubr.msk.f32.mxu0 %vm2603_vm1, %v2602_v8 }
 0xd28   :  { %v1156_v11 = vpop.xlane.xlu0 %1155 }
 0xd29   :  { %v1157_v62 = vmul.f32 0.03125, %v1156_v11 }
 0xd2b   :  { %v1158_v63 = vadd.f32 1e-12, %v1157_v62 }
 0xd2d   :  { %2499 = vrsqrt.f32 %v1158_v63 }
 0xd37   :  { %v2500_v0 = vpop.eup %2499 }
 0xd38   :  { %v1160_v13 = vmul.f32 %v2500_v0, %v1152_v55 }
 0xd3a   :  { %v1168_v4 = vmul.f32 %v2221_v1, %v1160_v13 }
 0xd3c   :  { %v1176_v5 = vadd.f32 %v2222_v3, %v1168_v4 }
 0xd3e   :  { %1177 = vst.msk [vmem:[#allocation8] sm:$0xff] %vm85_vm0, %v1176_v5 }
 0xdab   :  { %v2075_v6 = vpop.f32.mrb[12].mxu0 }
 0xdac   :  { %v2421_v8 = vpop.f32.mrb[13].mxu0  ;;  %2425 = vmatmul.mubr.msk.f32.vlgmr.msra.gmra.mrb[8].mxu0 %vm186_vm2, %v2075_v6 }
 0xe7f   :  { %v2148_v12 = vpop.f32.mrb[8].mxu0 }
 0xe80   :  { %v2437_v14 = vadd.f32 %v2148_v12, %v1189_v10  ;;  %v2426_v15 = vpop.f32.mrb[9].mxu0 }
 0xe82   :  { %v2153_v17 = vsel %vm85_vm0, %v2437_v14, 0.0 }
 0xe83   :  { %2154 = vadd.xlane.f32.xlu1 %v2153_v17 }
 0xf10   :  { %v2155_v20 = vpop.xlane.xlu1 %2154 }
 0xf11   :  { %v2156_v21 = vmul.f32 0.03125, %v2155_v20 }
 0xf13   :  { %v2157_v22 = vsub.f32 %v2437_v14, %v2156_v21 }
 0xf15   :  { %v2158_v16 = vmul.f32 %v2157_v22, %v2157_v22 }
 0xf17   :  { %v2159_v2 = vsel %vm85_vm0, %v2158_v16, 0.0 }
 0xf18   :  { %2160 = vadd.xlane.f32.xlu0 %v2159_v2 }
 0xfa5   :  { %v2161_v23 = vpop.xlane.xlu0 %2160 }
 0xfa6   :  { %v2162_v18 = vmul.f32 0.03125, %v2161_v23 }
 0xfa8   :  { %v2163_v24 = vadd.f32 1e-12, %v2162_v18 }
 0xfaa   :  { %2501 = vrsqrt.f32 %v2163_v24 }
 0xfb4   :  { %v2502_v25 = vpop.eup %2501 }
 0xfb5   :  { %v2165_v26 = vmul.f32 %v2502_v25, %v2157_v22 }
 0xfb7   :  { %v2173_v7 = vmul.f32 %v2221_v1, %v2165_v26 }
 0xfb9   :  { %v2181_v41 = vadd.f32 %v2222_v3, %v2173_v7 }
 0xfbb   :  { %2182 = vst.msk [vmem:[#allocation8 + $0x8] sm:$0xff] %vm85_vm0, %v2181_v41 }
 0xfbc   :  { %2580 = shalt.err (!%p2577_p0)
}
 0xfbd   :  { %s2581_s0 = scalar_lea.hbm %s2989_s8, 256 }
 0xfbe   :  { %p2582_p1 = scmp.ne.s32.totalorder %s2989_s8, %s2581_s0  ;;  %p2585_p2 = scmp.lt.u32.totalorder %s2581_s0, %s2989_s8 }
 0xfc0   :  { %p2587_p3 = pnand %p2585_p2, %p2582_p1 }
 0xfc2   :  { %2590 = shalt.err (!%p2587_p3)
}
 0xfc3   :  { %2194 = dma.vmem_to_hbm [thread:$0]  %s2189_s7, 256, %s2989_s8, [#allocation4], %s2599_s17, %s2599_s17, %s2600_s18  }
 0xfc4   :  { %2595 = dma.done.wait [#allocation4], 256  }
 0xfc5   :  { %2596 = vsyncadd [#allocation4], 4294967040 }
 0xfc6   :  { %2198 = vsyncpa [#allocation3], 1 }
 0xfc7   :  { %2199 = vsyncpa [#allocation6], 1 }
 0xfc8   :  { %2200 = vsyncpa [#allocation4], 1 }

</bundles_post_ra>
